<compile_context>
chip_gen: v7x
topology: tpu7x:2x2x1
jax: 0.10.0
libtpu: 0.0.40
codegen_flags: <defaults>
</compile_context>

<pallas_src>
import functools

import jax
import jax.numpy as jnp
from jax.experimental import pallas as pl
from jax.experimental.pallas import tpu as pltpu

BN_EPS = 1e-5
LANE = 128
VMEM_LIMIT_BYTES = 48 * 1024 * 1024   # below v7x 64 MiB phys, above v5e/v6e scoped default
TILE_BUDGET_BYTES = 20 * 1024 * 1024  # target streamed + live bytes per grid step


# ----------------------------- plain-JAX glue -------------------------------
def square_distance(src, dst):
    # src [B,N,C], dst [B,M,C] -> [B,N,M]
    dist = -2.0 * jnp.einsum("bnc,bmc->bnm", src, dst)
    dist = dist + jnp.sum(src ** 2, axis=-1)[:, :, None]
    dist = dist + jnp.sum(dst ** 2, axis=-1)[:, None, :]
    return dist


def knn_point(nsample, xyz, new_xyz):
    # torch.topk(..., largest=False, sorted=False): k smallest distances.
    sqrdists = square_distance(new_xyz, xyz)             # [B, S, N]
    _, group_idx = jax.lax.top_k(-sqrdists, nsample)      # [B, S, nsample]
    return group_idx


def index_points(points, idx):
    # points [B,N,C], idx [B,S,K] -> [B,S,K,C]
    return jnp.take_along_axis(points[:, None, :, :], idx[..., None], axis=2)


def _round_up(x, m):
    return ((x + m - 1) // m) * m


def _choose_group_tile(G, K, cmax):
    """Sampled-point groups per grid step: G % tg == 0 and (tg*K) % 8 == 0."""
    # rough bytes / row / channel: bf16 in+out double-buffered (2*2*2) + f32 live (~8)
    per_row = 16 * cmax + 64
    max_rows = max(TILE_BUDGET_BYTES // per_row, K)
    max_tg = max(int(max_rows // K), 1)
    best = None
    for d in range(1, min(G, max_tg) + 1):
        if G % d == 0 and (d * K) % 16 == 0:   # prefer bf16-pack-friendly tiles
            best = d
    if best is None:
        for d in range(1, min(G, max_tg) + 1):
            if G % d == 0 and (d * K) % 8 == 0:
                best = d
    # Fallback: single tile; block row count then equals the full dim (always legal).
    return best if best is not None else G


# ------------------------------ Pallas kernels --------------------------------
def _conv_stats_kernel(x_ref, w_ref, h_ref, s1_ref, s2_ref):
    """h = x @ W ; accumulate per-channel sum / sum-of-squares across row tiles."""
    @pl.when(pl.program_id(0) == 0)
    def _init():
        s1_ref[...] = jnp.zeros_like(s1_ref)
        s2_ref[...] = jnp.zeros_like(s2_ref)

    h = jnp.dot(x_ref[...], w_ref[...], preferred_element_type=jnp.float32)
    h_ref[...] = h.astype(h_ref.dtype)
    s1_ref[...] += jnp.sum(h, axis=0, keepdims=True)
    s2_ref[...] += jnp.sum(h * h, axis=0, keepdims=True)


def _norm_conv_stats_kernel(hp_ref, scale_ref, shift_ref, w_ref, h_ref, s1_ref, s2_ref):
    """a = relu(h_prev*scale + shift) (folded BN FMA, f32); h = a @ W; accumulate stats."""
    @pl.when(pl.program_id(0) == 0)
    def _init():
        s1_ref[...] = jnp.zeros_like(s1_ref)
        s2_ref[...] = jnp.zeros_like(s2_ref)

    a = hp_ref[...].astype(jnp.float32)
    a = jnp.maximum(a * scale_ref[...] + shift_ref[...], 0.0)
    h = jnp.dot(a.astype(jnp.bfloat16), w_ref[...], preferred_element_type=jnp.float32)
    h_ref[...] = h.astype(h_ref.dtype)
    s1_ref[...] += jnp.sum(h, axis=0, keepdims=True)
    s2_ref[...] += jnp.sum(h * h, axis=0, keepdims=True)


def _norm_relu_max_kernel(K, h_ref, scale_ref, shift_ref, out_ref):
    """out[g,:] = max_k relu(h[g,k,:]*scale + shift); block is (TG, K, C)."""
    a = h_ref[...].astype(jnp.float32)                         # (TG, K, C)
    scale = scale_ref[...].reshape(1, 1, -1)
    shift = shift_ref[...].reshape(1, 1, -1)
    a = jnp.maximum(a * scale + shift, 0.0)
    kk = K
    while kk > 8 and kk % 16 == 0:     # VPU maximum tree, sublane-aligned slices
        half = kk // 2
        a = jnp.maximum(a[:, :half, :], a[:, half:, :])
        kk = half
    out_ref[...] = jnp.max(a, axis=1).astype(out_ref.dtype)    # small XLU reduce (<=8 or odd K)


# ------------------------------ MLP driver -----------------------------------
def _run_sa_mlp(grouped_points, params):
    """grouped_points: [B, S, K, C0]; params: list of (w [Cin,Cout], b, gamma, beta).

    Computes  max_K relu(BN(Conv1x1(...)))  per MLP layer with training-mode
    batch statistics (identical to the torch forward); returns [B, S, Cout] f32.
    """
    B, S, K, C0 = grouped_points.shape
    G = B * S
    R = G * K
    n_layers = len(params)

    # ---- channel padding: Cin -> multiple of 8, MLP widths -> multiples of 128
    c_in_pad = _round_up(max(C0, 8), 8)
    widths = [w.shape[1] for (w, _, _, _) in params]
    widths_pad = [_round_up(c, LANE) for c in widths]

    # Padded bf16 weights + padded f32 gamma/beta.  Conv bias cancels exactly
    # under training-mode BatchNorm (it only shifts the batch mean), so it is
    # dropped from the kernel math.  Zero-padded channels carry gamma=beta=0,
    # so they stay exactly 0 through every layer and are sliced off at the end.
    w_pad, gamma_pad, beta_pad = [], [], []
    prev_pad = c_in_pad
    for (w, _b, gamma, beta), cp in zip(params, widths_pad):
        cin_r, cout_r = w.shape
        w_pad.append(jnp.pad(w.astype(jnp.float32),
                             ((0, prev_pad - cin_r), (0, cp - cout_r))).astype(jnp.bfloat16))
        gamma_pad.append(jnp.pad(gamma.reshape(1, -1).astype(jnp.float32),
                                 ((0, 0), (0, cp - cout_r))))
        beta_pad.append(jnp.pad(beta.reshape(1, -1).astype(jnp.float32),
                                ((0, 0), (0, cp - cout_r))))
        prev_pad = cp

    # ---- gathered activations: bf16 stream, channel-padded, flattened to rows
    x0 = jnp.pad(grouped_points.astype(jnp.bfloat16),
                 ((0, 0), (0, 0), (0, 0), (0, c_in_pad - C0))).reshape(R, c_in_pad)

    # ---- row tiling
    cmax = max([c_in_pad] + widths_pad)
    tg = _choose_group_tile(G, K, cmax)
    n_tiles = G // tg
    rows_t = tg * K
    count = float(R)

    def stats_to_scale_shift(s1, s2, gamma, beta):
        mean = s1 / count
        var = jnp.maximum(s2 / count - mean * mean, 0.0)   # clamp single-pass var
        scale = gamma * jax.lax.rsqrt(var + BN_EPS)
        shift = beta - mean * scale
        return scale, shift

    cp_arb = pltpu.CompilerParams(dimension_semantics=("arbitrary",),
                                  vmem_limit_bytes=VMEM_LIMIT_BYTES)
    cp_par = pltpu.CompilerParams(dimension_semantics=("parallel",),
                                  vmem_limit_bytes=VMEM_LIMIT_BYTES)

    # ---- layer 0: conv + cross-tile stats
    c_out = widths_pad[0]
    h, s1, s2 = pl.pallas_call(
        _conv_stats_kernel,
        out_shape=(jax.ShapeDtypeStruct((R, c_out), jnp.bfloat16),
                   jax.ShapeDtypeStruct((1, c_out), jnp.float32),
                   jax.ShapeDtypeStruct((1, c_out), jnp.float32)),
        grid_spec=pltpu.PrefetchScalarGridSpec(
            num_scalar_prefetch=0, grid=(n_tiles,),
            in_specs=[pl.BlockSpec((rows_t, c_in_pad), lambda i: (i, 0)),
                      pl.BlockSpec((c_in_pad, c_out), lambda i: (0, 0))],
            out_specs=[pl.BlockSpec((rows_t, c_out), lambda i: (i, 0)),
                       pl.BlockSpec((1, c_out), lambda i: (0, 0)),
                       pl.BlockSpec((1, c_out), lambda i: (0, 0))]),
        compiler_params=cp_arb,
    )(x0, w_pad[0])
    scale, shift = stats_to_scale_shift(s1, s2, gamma_pad[0], beta_pad[0])

    # ---- layers 1..L-1: fused (normalize previous + conv + stats)
    for li in range(1, n_layers):
        c_in, c_out = widths_pad[li - 1], widths_pad[li]
        h, s1, s2 = pl.pallas_call(
            _norm_conv_stats_kernel,
            out_shape=(jax.ShapeDtypeStruct((R, c_out), jnp.bfloat16),
                       jax.ShapeDtypeStruct((1, c_out), jnp.float32),
                       jax.ShapeDtypeStruct((1, c_out), jnp.float32)),
            grid_spec=pltpu.PrefetchScalarGridSpec(
                num_scalar_prefetch=0, grid=(n_tiles,),
                in_specs=[pl.BlockSpec((rows_t, c_in), lambda i: (i, 0)),
                          pl.BlockSpec((1, c_in), lambda i: (0, 0)),
                          pl.BlockSpec((1, c_in), lambda i: (0, 0)),
                          pl.BlockSpec((c_in, c_out), lambda i: (0, 0))],
                out_specs=[pl.BlockSpec((rows_t, c_out), lambda i: (i, 0)),
                           pl.BlockSpec((1, c_out), lambda i: (0, 0)),
                           pl.BlockSpec((1, c_out), lambda i: (0, 0))]),
            compiler_params=cp_arb,
        )(h, scale, shift, w_pad[li])
        scale, shift = stats_to_scale_shift(s1, s2, gamma_pad[li], beta_pad[li])

    # ---- final: normalize last layer + ReLU + max over K neighbors
    c_last = widths_pad[-1]
    out = pl.pallas_call(
        functools.partial(_norm_relu_max_kernel, K),
        out_shape=jax.ShapeDtypeStruct((G, c_last), jnp.float32),
        grid_spec=pltpu.PrefetchScalarGridSpec(
            num_scalar_prefetch=0, grid=(n_tiles,),
            in_specs=[pl.BlockSpec((tg, K, c_last), lambda i: (i, 0, 0)),
                      pl.BlockSpec((1, c_last), lambda i: (0, 0)),
                      pl.BlockSpec((1, c_last), lambda i: (0, 0))],
            out_specs=pl.BlockSpec((tg, c_last), lambda i: (i, 0))),
        compiler_params=cp_par,
    )(h.reshape(G, K, c_last), scale, shift)

    return out[:, :widths[-1]].reshape(B, S, widths[-1])


# ------------------------------ module wrapper --------------------------------
def _group_points(xyz, points, *, npoint, nsample, group_all, perm_key):
    """Mirrors the grouping part of PointNetSetAbstraction.forward."""
    B, N, C = xyz.shape
    if points is None:
        points = xyz
    if group_all:
        new_xyz = jnp.zeros((B, 1, C), dtype=xyz.dtype)
        grouped = points.reshape(B, 1, N, -1)
    else:
        if npoint is not None:
            # torch.randperm(N)[:npoint] analogue (same permutation for all batches)
            idx = jax.random.permutation(perm_key, N)[:npoint]
            new_xyz = xyz[:, idx, :]
            new_points = points[:, idx, :]
        else:
            new_xyz = xyz
            new_points = points
        # NOTE: the reference torch module queries kNN in *feature* space
        # (knn_point(nsample, points, new_points)), so we do too.
        knn_idx = knn_point(nsample, points, new_points)   # [B, S, K]
        grouped = index_points(points, knn_idx)            # [B, S, K, D]
    return new_xyz, grouped


def pointnet_set_abstraction(xyz, points, params, *, npoint, nsample,
                             group_all=False, perm_key=None):
    """xyz [B,N,C], points [B,N,D] -> (new_xyz [B,S,C], new_points [B,S,Cout])."""
    new_xyz, grouped = _group_points(xyz, points, npoint=npoint, nsample=nsample,
                                     group_all=group_all, perm_key=perm_key)
    # TODO(synk): fuse this K-fold neighbor gather into the first Pallas pass
    # (scalar-prefetched knn indices + in-VMEM gather) to avoid materializing
    # grouped_points in HBM.
    new_feat = _run_sa_mlp(grouped.astype(jnp.bfloat16), params)
    return new_xyz, new_feat


# ------------------------------ f32 reference ---------------------------------
def _reference_forward(grouped_points, params):
    """Pure-JAX f32 reference of conv1x1 -> BN(train) -> ReLU per layer + K-max."""
    x = grouped_points.astype(jnp.float32)                 # [B,S,K,C]
    for (w, b, gamma, beta) in params:
        h = jnp.einsum("bskc,cm->bskm", x, w) + b.reshape(1, 1, 1, -1)
        mean = jnp.mean(h, axis=(0, 1, 2), keepdims=True)
        var = jnp.mean((h - mean) ** 2, axis=(0, 1, 2), keepdims=True)
        h = (h - mean) * jax.lax.rsqrt(var + BN_EPS)
        h = h * gamma.reshape(1, 1, 1, -1) + beta.reshape(1, 1, 1, -1)
        x = jnp.maximum(h, 0.0)
    return jnp.max(x, axis=2)                              # [B,S,M]


# ----------------------------------- main -------------------------------------
if __name__ == "__main__":
    key = jax.random.PRNGKey(0)

    # Module config (synthetic): in_channel=3, use_xyz=True -> first conv sees
    # in_channel + 3 = 6 channels, so point features must have D = 6.
    B, N = 2, 16
    C_XYZ = 3
    IN_CHANNEL = 3
    D = IN_CHANNEL + 3
    MLP = [16, 32]
    NPOINT, NSAMPLE = 8, 8

    k_xyz, k_pts, k_perm, k_w = jax.random.split(key, 4)
    xyz = jax.random.normal(k_xyz, (B, N, C_XYZ), dtype=jnp.float32)
    points = jax.random.normal(k_pts, (B, N, D), dtype=jnp.float32)

    # Deterministic parameter init: Conv2d(1x1) weight/bias + BatchNorm2d
    # gamma/beta per MLP layer.  Conv weight stored transposed as [Cin, Cout].
    params = []
    last = D
    for out_ch in MLP:
        kw, kb, kg, kbt, k_w = jax.random.split(k_w, 5)
        w = 0.1 * jax.random.normal(kw, (last, out_ch), dtype=jnp.float32)
        b = 0.1 * jax.random.normal(kb, (1, out_ch), dtype=jnp.float32)
        gamma = 1.0 + 0.1 * jax.random.normal(kg, (1, out_ch), dtype=jnp.float32)
        beta = 0.1 * jax.random.normal(kbt, (1, out_ch), dtype=jnp.float32)
        params.append((w, b, gamma, beta))
        last = out_ch

    new_xyz, new_points = pointnet_set_abstraction(
        xyz, points, params, npoint=NPOINT, nsample=NSAMPLE,
        group_all=False, perm_key=k_perm)
    jax.block_until_ready((new_xyz, new_points))

    assert new_xyz.shape == (B, NPOINT, C_XYZ)
    assert new_points.shape == (B, NPOINT, MLP[-1])
    assert bool(jnp.all(jnp.isfinite(new_points)))

    # Correctness check against the f32 reference (same grouping; loose
    # tolerance accounts for the bf16 activation/weight streams).
    _, grouped_ref = _group_points(xyz, points, npoint=NPOINT, nsample=NSAMPLE,
                                   group_all=False, perm_key=k_perm)
    ref = _reference_forward(grouped_ref, params)
    err = float(jnp.max(jnp.abs(new_points - ref)))
    assert err < 0.2, f"max abs error vs f32 reference: {err}"

    print("KERNEL_OK")
</pallas_src>

<mosaic_0001>
module attributes {stable_mosaic.version = 11 : i64} {
  func.func @_conv_stats_kernel(%arg0: i32, %arg1: memref<128x8xbf16, #tpu.memory_space<vmem>>, %arg2: memref<8x128xbf16, #tpu.memory_space<vmem>>, %arg3: memref<128x128xbf16, #tpu.memory_space<vmem>>, %arg4: memref<1x128xf32, #tpu.memory_space<vmem>>, %arg5: memref<1x128xf32, #tpu.memory_space<vmem>>) attributes {dimension_semantics = [#tpu.dimension_semantics<arbitrary>], iteration_bounds = array<i64: 1>, scalar_prefetch = 0 : i64, scratch_operands = 0 : i64, tpu.core_type = #tpu.core_type<tc>, window_params = [{transform_indices = @transform_0, window_bounds = array<i64: 128, 8>}, {pipeline_mode = #tpu.pipeline_mode<synchronous>, transform_indices = @transform_1, window_bounds = array<i64: 8, 128>}, {transform_indices = @transform_2, window_bounds = array<i64: 128, 128>}, {pipeline_mode = #tpu.pipeline_mode<synchronous>, transform_indices = @transform_3, window_bounds = array<i64: 1, 128>}, {pipeline_mode = #tpu.pipeline_mode<synchronous>, transform_indices = @transform_4, window_bounds = array<i64: 1, 128>}]} {
    %c0_i32 = arith.constant 0 : i32
    %0 = arith.cmpi eq, %arg0, %c0_i32 : i32
    %1 = arith.extui %0 : i1 to i32
    %c0_i32_0 = arith.constant 0 : i32
    %2 = arith.cmpi ne, %1, %c0_i32_0 : i32
    scf.if %2 {
      %cst_16 = arith.constant 0.000000e+00 : f32
      %19 = vector.broadcast %cst_16 : f32 to vector<1x128xf32>
      %c0_17 = arith.constant 0 : index
      %c0_18 = arith.constant 0 : index
      %20 = vector.load %arg4[%c0_17, %c0_18] : memref<1x128xf32, #tpu.memory_space<vmem>>, vector<1x128xf32>
      tpu.vector_store %arg4[%c0_17, %c0_18], %19 {strides = array<i32>} : memref<1x128xf32, #tpu.memory_space<vmem>>, vector<1x128xf32>,
      %cst_19 = arith.constant 0.000000e+00 : f32
      %21 = vector.broadcast %cst_19 : f32 to vector<1x128xf32>
      %c0_20 = arith.constant 0 : index
      %c0_21 = arith.constant 0 : index
      %22 = vector.load %arg5[%c0_20, %c0_21] : memref<1x128xf32, #tpu.memory_space<vmem>>, vector<1x128xf32>
      tpu.vector_store %arg5[%c0_20, %c0_21], %21 {strides = array<i32>} : memref<1x128xf32, #tpu.memory_space<vmem>>, vector<1x128xf32>,
    } else {
    }
    %c0 = arith.constant 0 : index
    %c0_1 = arith.constant 0 : index
    %3 = vector.load %arg1[%c0, %c0_1] : memref<128x8xbf16, #tpu.memory_space<vmem>>, vector<128x8xbf16>
    %c0_2 = arith.constant 0 : index
    %c0_3 = arith.constant 0 : index
    %4 = vector.load %arg2[%c0_2, %c0_3] : memref<8x128xbf16, #tpu.memory_space<vmem>>, vector<8x128xbf16>
    %cst = arith.constant dense<0.000000e+00> : vector<128x128xf32>
    %5 = tpu.matmul %3, %4, %cst {dimension_numbers = #tpu.dot_dimension_numbers<[1], [0], [0], [1], [0, 0, 1, 1], [], []>} : vector<128x8xbf16>, vector<8x128xbf16>, vector<128x128xf32> -> vector<128x128xf32>
    %6 = arith.truncf %5 : vector<128x128xf32> to vector<128x128xbf16>
    %c0_4 = arith.constant 0 : index
    %c0_5 = arith.constant 0 : index
    %7 = vector.load %arg3[%c0_4, %c0_5] : memref<128x128xbf16, #tpu.memory_space<vmem>>, vector<128x128xbf16>
    tpu.vector_store %arg3[%c0_4, %c0_5], %6 {strides = array<i32>} : memref<128x128xbf16, #tpu.memory_space<vmem>>, vector<128x128xbf16>,
    %c0_6 = arith.constant 0 : index
    %c0_7 = arith.constant 0 : index
    %8 = vector.load %arg4[%c0_6, %c0_7] : memref<1x128xf32, #tpu.memory_space<vmem>>, vector<1x128xf32>
    %cst_8 = arith.constant dense<0.000000e+00> : vector<128xf32>
    %9 = vector.multi_reduction <add>, %5, %cst_8 [0] : vector<128x128xf32> to vector<128xf32>
    %10 = vector.shape_cast %9 : vector<128xf32> to vector<1x128xf32>
    %11 = arith.addf %8, %10 : vector<1x128xf32>
    %c0_9 = arith.constant 0 : index
    %c0_10 = arith.constant 0 : index
    %12 = vector.load %arg4[%c0_9, %c0_10] : memref<1x128xf32, #tpu.memory_space<vmem>>, vector<1x128xf32>
    tpu.vector_store %arg4[%c0_9, %c0_10], %11 {strides = array<i32>} : memref<1x128xf32, #tpu.memory_space<vmem>>, vector<1x128xf32>,
    %c0_11 = arith.constant 0 : index
    %c0_12 = arith.constant 0 : index
    %13 = vector.load %arg5[%c0_11, %c0_12] : memref<1x128xf32, #tpu.memory_space<vmem>>, vector<1x128xf32>
    %14 = arith.mulf %5, %5 : vector<128x128xf32>
    %cst_13 = arith.constant dense<0.000000e+00> : vector<128xf32>
    %15 = vector.multi_reduction <add>, %14, %cst_13 [0] : vector<128x128xf32> to vector<128xf32>
    %16 = vector.shape_cast %15 : vector<128xf32> to vector<1x128xf32>
    %17 = arith.addf %13, %16 : vector<1x128xf32>
    %c0_14 = arith.constant 0 : index
    %c0_15 = arith.constant 0 : index
    %18 = vector.load %arg5[%c0_14, %c0_15] : memref<1x128xf32, #tpu.memory_space<vmem>>, vector<1x128xf32>
    tpu.vector_store %arg5[%c0_14, %c0_15], %17 {strides = array<i32>} : memref<1x128xf32, #tpu.memory_space<vmem>>, vector<1x128xf32>,
    return
  }
  func.func @transform_0(%arg0: i32) -> (i32, i32) {
    %c0_i32 = arith.constant 0 : i32
    %c0_i32_0 = arith.constant 0 : i32
    return %arg0, %c0_i32 : i32, i32
  }
  func.func @transform_1(%arg0: i32) -> (i32, i32) {
    %c0_i32 = arith.constant 0 : i32
    %c0_i32_0 = arith.constant 0 : i32
    %c0_i32_1 = arith.constant 0 : i32
    return %c0_i32, %c0_i32_0 : i32, i32
  }
  func.func @transform_2(%arg0: i32) -> (i32, i32) {
    %c0_i32 = arith.constant 0 : i32
    %c0_i32_0 = arith.constant 0 : i32
    return %arg0, %c0_i32 : i32, i32
  }
  func.func @transform_3(%arg0: i32) -> (i32, i32) {
    %c0_i32 = arith.constant 0 : i32
    %c0_i32_0 = arith.constant 0 : i32
    %c0_i32_1 = arith.constant 0 : i32
    return %c0_i32, %c0_i32_0 : i32, i32
  }
  func.func @transform_4(%arg0: i32) -> (i32, i32) {
    %c0_i32 = arith.constant 0 : i32
    %c0_i32_0 = arith.constant 0 : i32
    %c0_i32_1 = arith.constant 0 : i32
    return %c0_i32, %c0_i32_0 : i32, i32
  }
}

</mosaic_0001>

<bundles_post_ra>
// kernel: tpu_custom_call.1
= control target key start
LH: loop header
LB: loop body
LE: loop exit
PB: predicated region body
PF: predicated region fallthrough
CT: control target
= control target key end

     0   :  { %10 = vsyncpa [#allocation3], 0  ;;  %vm105_vm0 = vcmask 1043456   ;;  %vm80_vm1 = vcmask 64512   ;;  %s725_s0 = inlined_call_operand.vmem [shape: bf16[128,8], index: 0, kind: input, shape index: {}]   ;;  %s726_s1 = inlined_call_operand.vmem [shape: bf16[8,128], index: 1, kind: input, shape index: {}]   ;;  %s727_s2 = inlined_call_operand.hbm [shape: bf16[128,128], index: 2, kind: output, shape index: {0}]   ;;  %s728_s3 = inlined_call_operand.hbm [shape: f32[1,128], index: 3, kind: output, shape index: {1}]   ;;  %s729_s4 = inlined_call_operand.hbm [shape: f32[1,128], index: 4, kind: output, shape index: {2}]  }
   0x1   :  { %v39_v0 = vld [vmem:[%s726_s1] sm:$0xf]  ;;  %v526_v3 = vld [vmem:[%s725_s0 + $0x8] sm:$0xff]   ;;  %v527_v4 = vld [vmem:[%s725_s0 + $0x10] sm:$0xff]  }
   0x2   :  { %v525_v1 = vld [vmem:[%s725_s0] sm:$0xff]   ;;  %517 = vmatprep.subr.msk.bf16.mxu0 %vm105_vm0, %v39_v0  ;;  %v107_v2 = vsel %vm105_vm0, %v39_v0, 0  ;;  %518 = vmatprep.subr.msk.bf16.mxu1 %vm105_vm0, %v39_v0  ;;  %v530_v6 = vld [vmem:[%s725_s0 + $0x28] sm:$0xff]   ;;  %v531_v7 = vld [vmem:[%s725_s0 + $0x30] sm:$0xff]  }
   0x3   :  { %498 = vmatpush3.bf16.msra.mxu0 %v107_v2  ;;  %499 = vmatprep.mubr.msk.bf16.mxu0 %vm80_vm1, %v525_v1  ;;  %v529_v5 = vld [vmem:[%s725_s0 + $0x20] sm:$0xff]  }
   0x4   :  { %516 = vmatpush3.bf16.msra.mxu1 %v107_v2  ;;  %507 = vmatprep.mubr.msk.bf16.mxu1 %vm80_vm1, %v529_v5 }
   0x6   :  { %500 = vmatmul.mubr.msk.bf16.vlgmr.msra.gmra.mrb[0].mxu0 %vm80_vm1, %v526_v3 }
   0x7   :  { %503 = vmatprep.mubr.msk.bf16.mxu0 %vm80_vm1, %v527_v4  ;;  %508 = vmatmul.mubr.msk.bf16.vlgmr.msra.gmra.mrb[0].mxu1 %vm80_vm1, %v530_v6 }
   0x8   :  { %11 = vsyncpa [#allocation5], 0  ;;  %v528_v8 = vld [vmem:[%s725_s0 + $0x18] sm:$0xff]   ;;  %511 = vmatprep.mubr.msk.bf16.mxu1 %vm80_vm1, %v531_v7  ;;  %v603_v10 = vmov 0.0  }
   0x9   :  { %v532_v9 = vld [vmem:[%s725_s0 + $0x38] sm:$0xff]   ;;  %21 = vst [vmem:[#allocation4] sm:$0x1] %v603_v10  ;;  %22 = vst [vmem:[#allocation6] sm:$0x1] %v603_v10  ;;  %s604_s0 = smov [#allocation2]  }
   0xa   :  { %s355_s6 = sshll.u32 %s604_s0, 4  ;;  %s356_s6 = int_to_ptr.vmem [resolvable:$true] %s355_s6 }
   0xb   :  { %s533_s7 = scalar_lea.vmem %s356_s6, 1024  ;;  %p538_p1 = scmp.lt.s32.totalorder %s356_s6, %s356_s6 }
   0xc   :  { %p534_p0 = scmp.ne.s32.totalorder %s356_s6, %s533_s7  ;;  %p539_p2 = scmp.lt.s32.totalorder %s533_s7, %s533_s7 }
   0xe   :  { %504 = vmatmul.mubr.msk.bf16.gmra.mrb[4].mxu0 %vm80_vm1, %v528_v8  ;;  %p540_p3 = por %p539_p2, %p538_p1 }
   0xf   :  { %512 = vmatmul.mubr.msk.bf16.gmra.mrb[4].mxu1 %vm80_vm1, %v532_v9 }
  0x10   :  { %p541_p4 = pnand %p540_p3, %p534_p0 }
  0xd9   :  { %v501_v11 = vpop.f32.mrb[0].mxu0 }
  0xda   :  { %v143_v12 = vpop.f32.mrb[1].mxu0  ;;  %v669_v16 = vpop.f32.mrb[0].mxu1  ;;  %v313_v23 = vmul.f32 %v501_v11, %v501_v11 }
  0xdb   :  { %v502_v13 = vpop.f32.mrb[2].mxu0  ;;  %v311_v17 = vmul.f32 %v143_v12, %v143_v12  ;;  %v175_v21 = vpop.f32.mrb[1].mxu1 }
  0xdc   :  { %v449_v14 = vpack.c.bf16 %v502_v13, %v501_v11  ;;  %v146_v15 = vpop.f32.mrb[3].mxu0  ;;  %v671_v22 = vpop.f32.mrb[2].mxu1  ;;  %v314_v29 = vmul.f32 %v502_v13, %v502_v13  ;;  %v319_v56 = vmul.f32 %v175_v21, %v175_v21 }
  0xdd   :  { %v444_v18 = vpack.c.bf16 %v146_v15, %v143_v12  ;;  %v287_v19 = vadd.f32 %v146_v15, %v143_v12  ;;  %v312_v20 = vmul.f32 %v146_v15, %v146_v15  ;;  %v469_v26 = vpack.c.bf16 %v671_v22, %v669_v16  ;;  %v178_v27 = vpop.f32.mrb[3].mxu1 }
  0xde   :  { %481 = vst [vmem:[#allocation2 + $0x8] sm:$0xff] %v449_v14   ;;  %v464_v28 = vpack.c.bf16 %v178_v27, %v175_v21 }
  0xdf   :  { %445 = vst [vmem:[#allocation2] sm:$0xff] %v444_v18   ;;  %v288_v24 = vadd.f32 %v501_v11, %v287_v19  ;;  %v327_v25 = vadd.f32 %v312_v20, %v311_v17  ;;  %485 = vst [vmem:[#allocation2 + $0x28] sm:$0xff] %v469_v26  }
  0xe0   :  { %484 = vst [vmem:[#allocation2 + $0x20] sm:$0xff] %v464_v28  }
  0xe1   :  { %v328_v30 = vadd.f32 %v327_v25, %v313_v23  ;;  %v505_v31 = vpop.f32.mrb[4].mxu0  ;;  %v289_v32 = vadd.f32 %v502_v13, %v288_v24 }
  0xe2   :  { %v159_v33 = vpop.f32.mrb[5].mxu0  ;;  %v513_v40 = vpop.f32.mrb[4].mxu1  ;;  %v317_v47 = vmul.f32 %v505_v31, %v505_v31 }
  0xe3   :  { %v290_v34 = vadd.f32 %v289_v32, %v159_v33  ;;  %v315_v35 = vmul.f32 %v159_v33, %v159_v33  ;;  %v329_v36 = vadd.f32 %v328_v30, %v314_v29  ;;  %v506_v37 = vpop.f32.mrb[6].mxu0  ;;  %v191_v45 = vpop.f32.mrb[5].mxu1 }
  0xe4   :  { %v459_v38 = vpack.c.bf16 %v506_v37, %v505_v31  ;;  %v162_v39 = vpop.f32.mrb[7].mxu0  ;;  %v514_v46 = vpop.f32.mrb[6].mxu1  ;;  %v318_v53 = vmul.f32 %v506_v37, %v506_v37 }
  0xe5   :  { %v330_v41 = vadd.f32 %v329_v36, %v315_v35  ;;  %v454_v42 = vpack.c.bf16 %v162_v39, %v159_v33  ;;  %v291_v43 = vadd.f32 %v290_v34, %v162_v39  ;;  %v316_v44 = vmul.f32 %v162_v39, %v162_v39  ;;  %v194_v51 = vpop.f32.mrb[7].mxu1 }
  0xe6   :  { %483 = vst [vmem:[#allocation2 + $0x18] sm:$0xff] %v459_v38   ;;  %v479_v50 = vpack.c.bf16 %v514_v46, %v513_v40  ;;  %v474_v52 = vpack.c.bf16 %v194_v51, %v191_v45 }
  0xe7   :  { %482 = vst [vmem:[#allocation2 + $0x10] sm:$0xff] %v454_v42   ;;  %v292_v48 = vadd.f32 %v505_v31, %v291_v43  ;;  %v331_v49 = vadd.f32 %v330_v41, %v316_v44 }
  0xe8   :  { %487 = vst [vmem:[#allocation2 + $0x38] sm:$0xff] %v479_v50   ;;  %486 = vst [vmem:[#allocation2 + $0x30] sm:$0xff] %v474_v52  }
  0xe9   :  { %v332_v54 = vadd.f32 %v331_v49, %v317_v47  ;;  %v293_v55 = vadd.f32 %v506_v37, %v292_v48 }
  0xeb   :  { %v294_v57 = vadd.f32 %v293_v55, %v175_v21  ;;  %v333_v58 = vadd.f32 %v332_v54, %v318_v53 }
  0xec   :  { %544 = shalt.err (!%p541_p4)
}
  0xed   :  { %s545_s10 = scalar_lea.hbm %s727_s2, 1024 }
  0xee   :  { %p546_p5 = scmp.ne.s32.totalorder %s727_s2, %s545_s10  ;;  %p549_p6 = scmp.lt.u32.totalorder %s545_s10, %s727_s2 }
  0xf0   :  { %p551_p7 = pnand %p549_p6, %p546_p5 }
  0xf2   :  { %554 = shalt.err (!%p551_p7)
}
  0xf3   :  { %s605_s15 = smov 64   ;;  %s606_s16 = smov 4   ;;  %v334_v59 = vadd.f32 %v333_v58, %v319_v56  ;;  %v295_v60 = vadd.f32 %v294_v57, %v178_v27  ;;  %v320_v61 = vmul.f32 %v178_v27, %v178_v27  ;;  %v321_v62 = vmul.f32 %v669_v16, %v669_v16  ;;  %v286_v26 = vld [vmem:[#allocation4] sm:$0x1]  ;;  %v310_v29 = vld [vmem:[#allocation6] sm:$0x1] }
  0xf4   :  { %361 = dma.vmem_to_hbm [thread:$0]  %s356_s6, 1024, %s727_s2, [#allocation3], %s605_s15, %s605_s15, %s606_s16   ;;  %v322_v1 = vmul.f32 %v671_v22, %v671_v22  ;;  %v323_v4 = vmul.f32 %v191_v45, %v191_v45  ;;  %v324_v9 = vmul.f32 %v194_v51, %v194_v51  ;;  %v325_v10 = vmul.f32 %v513_v40, %v513_v40 }
  0xf5   :  { %v296_v63 = vadd.f32 %v669_v16, %v295_v60  ;;  %v335_v0 = vadd.f32 %v334_v59, %v320_v61  ;;  %v326_v13 = vmul.f32 %v514_v46, %v514_v46  ;;  %s607_s2 = smov [#allocation4]   ;;  %s608_s20 = smov [#allocation6]  }
  0xf6   :  { %s368_s19 = sshll.u32 %s607_s2, 4  ;;  %s378_s21 = sshll.u32 %s608_s20, 4  ;;  %s369_s19 = int_to_ptr.vmem [resolvable:$true] %s368_s19  ;;  %s693_s21 = int_to_ptr.vmem [resolvable:$true] %s378_s21 }
  0xf7   :  { %v336_v2 = vadd.f32 %v335_v0, %v321_v62  ;;  %v297_v3 = vadd.f32 %v671_v22, %v296_v63  ;;  %s555_s22 = scalar_lea.vmem %s369_s19, 16  ;;  %s559_s1 = scalar_lea.vmem %s369_s19, 32 }
  0xf8   :  { %p556_p8 = scmp.ne.s32.totalorder %s369_s19, %s555_s22  ;;  %p560_p9 = scmp.lt.s32.totalorder %s369_s19, %s369_s19 }
  0xf9   :  { %v298_v5 = vadd.f32 %v297_v3, %v191_v45  ;;  %v337_v6 = vadd.f32 %v336_v2, %v322_v1  ;;  %p561_p10 = scmp.lt.s32.totalorder %s559_s1, %s555_s22 }
  0xfb   :  { %v338_v7 = vadd.f32 %v337_v6, %v323_v4  ;;  %v299_v8 = vadd.f32 %v298_v5, %v194_v51  ;;  %p562_p11 = por %p561_p10, %p560_p9 }
  0xfd   :  { %v300_v11 = vadd.f32 %v513_v40, %v299_v8  ;;  %v339_v12 = vadd.f32 %v338_v7, %v324_v9  ;;  %p563_p12 = pnand %p562_p11, %p556_p8 }
  0xff   :  { %v301_v14 = vadd.f32 %v514_v46, %v300_v11  ;;  %v340_v15 = vadd.f32 %v339_v12, %v325_v10 }
 0x101   :  { %v302_v16 = vrot.slane %v301_v14, 4  ;;  %v341_v17 = vadd.f32 %v340_v15, %v326_v13 }
 0x103   :  { %v303_v18 = vadd.f32 %v302_v16, %v301_v14  ;;  %v342_v19 = vrot.slane %v341_v17, 4 }
 0x105   :  { %v304_v20 = vrot.slane %v303_v18, 2  ;;  %v343_v21 = vadd.f32 %v342_v19, %v341_v17 }
 0x107   :  { %v305_v23 = vadd.f32 %v304_v20, %v303_v18  ;;  %v344_v22 = vrot.slane %v343_v21, 2 }
 0x109   :  { %v306_v24 = vrot.slane %v305_v23, 1  ;;  %v345_v25 = vadd.f32 %v344_v22, %v343_v21 }
 0x10b   :  { %v307_v27 = vadd.f32 %v306_v24, %v305_v23  ;;  %v346_v28 = vrot.slane %v345_v25, 1 }
 0x10d   :  { %v308_v30 = vadd.f32 %v307_v27, %v286_v26  ;;  %v347_v31 = vadd.f32 %v346_v28, %v345_v25 }
 0x10f   :  { %309 = vst [vmem:[#allocation4] sm:$0x1] %v308_v30  ;;  %v348_v32 = vadd.f32 %v347_v31, %v310_v29 }
 0x110   :  { %566 = shalt.err (!%p563_p12)
}
 0x111   :  { %s567_s25 = scalar_lea.hbm %s728_s3, 16 }
 0x112   :  { %p568_p13 = scmp.ne.s32.totalorder %s728_s3, %s567_s25  ;;  %p571_p0 = scmp.lt.u32.totalorder %s567_s25, %s728_s3 }
 0x114   :  { %p573_p1 = pnand %p571_p0, %p568_p13 }
 0x116   :  { %576 = shalt.err (!%p573_p1)
}
 0x117   :  { %371 = dma.vmem_to_hbm [thread:$0]  %s369_s19, 16, %s728_s3, [#allocation5]   ;;  %349 = vst [vmem:[#allocation6] sm:$0x1] %v348_v32 }
 0x118   :  { %s577_s0 = scalar_lea.vmem %s693_s21, 16  ;;  %s581_s6 = scalar_lea.vmem %s693_s21, 32 }
 0x119   :  { %p578_p2 = scmp.ne.s32.totalorder %s693_s21, %s577_s0  ;;  %p582_p3 = scmp.lt.s32.totalorder %s693_s21, %s693_s21 }
 0x11a   :  { %p583_p4 = scmp.lt.s32.totalorder %s581_s6, %s577_s0 }
 0x11c   :  { %p584_p5 = por %p583_p4, %p582_p3 }
 0x11e   :  { %p585_p6 = pnand %p584_p5, %p578_p2 }
 0x120   :  { %588 = shalt.err (!%p585_p6)
}
 0x121   :  { %s589_s9 = scalar_lea.hbm %s729_s4, 16 }
 0x122   :  { %p590_p7 = scmp.ne.s32.totalorder %s729_s4, %s589_s9  ;;  %p593_p8 = scmp.lt.u32.totalorder %s589_s9, %s729_s4 }
 0x124   :  { %p595_p9 = pnand %p593_p8, %p590_p7 }
 0x126   :  { %598 = shalt.err (!%p595_p9)
}
 0x127   :  { %381 = dma.vmem_to_hbm [thread:$0]  %s693_s21, 16, %s729_s4, [#allocation5]  }
 0x128   :  { %599 = dma.done.wait [#allocation3], 1024  }
 0x129   :  { %600 = vsyncadd [#allocation3], 4294966272 }
 0x12a   :  { %601 = dma.done.wait [#allocation5], 32  }
 0x12b   :  { %602 = vsyncadd [#allocation5], 4294967264 }
 0x12c   :  { %391 = vsyncpa [#allocation3], 1 }
 0x12d   :  { %392 = vsyncpa [#allocation5], 1 }

</bundles_post_ra>
